<compile_context>
chip_gen: v7x
topology: tpu7x:2x2x1
jax: 0.10.0
libtpu: 0.0.40
codegen_flags: <defaults>
</compile_context>

<pallas_src>
import functools

import jax
import jax.numpy as jnp
from jax.experimental import pallas as pl
from jax.experimental.pallas import tpu as pltpu


_LANES = 128
_MAX_BLOCK_ROWS = 2048  # ~1 MiB per f32 block; 2 inputs x 2 buffers = ~4 MiB in flight


def _quantile_loss_kernel(real_ref, pred_ref, out_ref, acc_ref, *, q, inv_n):
    step = pl.program_id(1)

    @pl.when(step == 0)
    def _():
        acc_ref[...] = jnp.zeros_like(acc_ref)

    r = real_ref[...]
    p = pred_ref[...]
    if r.dtype != jnp.float32:  # e.g. bf16 inputs: stream narrow, accumulate in f32
        r = r.astype(jnp.float32)
        p = p.astype(jnp.float32)

    diff = r - p
    loss = jnp.maximum(q * diff, (q - 1.0) * diff)  # pinball loss, pure VPU

    # Vreg-wise accumulation (VALU adds only); cross-lane reduce is deferred.
    acc_ref[...] += jnp.sum(loss.reshape(-1, 8, _LANES), axis=0)

    @pl.when(step == pl.num_programs(1) - 1)
    def _():
        # Fold the 1/N of the mean here; wrapper only sums the split partials.
        out_ref[...] = acc_ref[...] * inv_n


def quantile_loss(real, pred, *, q=0.5, max_block_rows=_MAX_BLOCK_ROWS):
    assert real.shape == pred.shape, (real.shape, pred.shape)
    n = int(real.size)
    assert n > 0, "empty input"

    # Stream f32 or bf16 natively; anything else is cast to f32 up front.
    in_dtype = jnp.bfloat16 if (real.dtype == jnp.bfloat16 and
                                pred.dtype == jnp.bfloat16) else jnp.float32
    itemsize = 2 if in_dtype == jnp.bfloat16 else 4
    sub = 16 if in_dtype == jnp.bfloat16 else 8  # sublane packing per dtype

    rf = real.reshape(-1).astype(in_dtype)
    pf = pred.reshape(-1).astype(in_dtype)

    # Lane-dense layout: (rows, 128), zero padded (exact for this loss).
    rows = pl.cdiv(n, _LANES)
    # v7x has 2 TensorCores: split the row range when there is enough work
    # for both cores to stream several full blocks each (harmless on 1-TC chips).
    splits = 2 if rows >= 4 * max_block_rows else 1
    rows_per_split = pl.cdiv(rows, splits)
    steps = pl.cdiv(rows_per_split, max_block_rows)
    block_rows = pl.cdiv(pl.cdiv(rows_per_split, steps), sub) * sub
    padded_rows = splits * steps * block_rows

    pad = padded_rows * _LANES - n
    if pad:
        rf = jnp.pad(rf, (0, pad))
        pf = jnp.pad(pf, (0, pad))
    rf = rf.reshape(padded_rows, _LANES)
    pf = pf.reshape(padded_rows, _LANES)

    # VMEM budget: 2 inputs x 2 pipeline buffers x block + slack, capped well
    # under v7x's 64 MiB physical VMEM (also fine on v5e/v6e's 128 MiB).
    block_bytes = block_rows * _LANES * itemsize
    vmem_limit = max(4 * block_bytes + (2 << 20), 16 << 20)
    vmem_limit = min(vmem_limit, 48 << 20)

    kernel = functools.partial(_quantile_loss_kernel,
                               q=float(q), inv_n=1.0 / float(n))

    partials = pl.pallas_call(
        kernel,
        out_shape=jax.ShapeDtypeStruct((splits, 8, _LANES), jnp.float32),
        grid_spec=pltpu.PrefetchScalarGridSpec(
            num_scalar_prefetch=0,
            grid=(splits, steps),
            in_specs=[
                pl.BlockSpec((block_rows, _LANES),
                             lambda c, i: (c * steps + i, 0)),
                pl.BlockSpec((block_rows, _LANES),
                             lambda c, i: (c * steps + i, 0)),
            ],
            # Per-split resident accumulator output (lane-dense, unmasked vst).
            out_specs=pl.BlockSpec((None, 8, _LANES), lambda c, i: (c, 0, 0)),
            scratch_shapes=[pltpu.VMEM((8, _LANES), jnp.float32)],
        ),
        compiler_params=pltpu.CompilerParams(
            dimension_semantics=("parallel", "arbitrary"),
            vmem_limit_bytes=vmem_limit,
        ),
    )(rf, pf)

    # Tiny tail: combine the (<= 2) split partials (1/N already folded in-kernel).
    return jnp.sum(partials)


class QuantileLoss:
    """JAX / Pallas port of the PyTorch QuantileLoss module."""

    def __init__(self, q=0.5):
        self.q = float(q)

    def __call__(self, real: jax.Array, pred: jax.Array) -> jax.Array:
        return quantile_loss(real, pred, q=self.q)


def _ref_quantile_loss(real, pred, q):
    diff = real - pred
    return jnp.mean(jnp.maximum(q * diff, (q - 1.0) * diff))


if __name__ == "__main__":
    key = jax.random.PRNGKey(0)
    k1, k2, k3, k4 = jax.random.split(key, 4)

    q = 0.3
    loss_fn = QuantileLoss(q)

    # Small shape consistent with the module's (time, batch) usage.
    T, B = 20, 8
    real = jax.random.normal(k1, (T, B), dtype=jnp.float32)
    pred = real + 0.1 * jax.random.normal(k2, (T, B), dtype=jnp.float32)

    out = loss_fn(real, pred)
    out = jax.block_until_ready(out)
    ref = _ref_quantile_loss(real, pred, q)
    assert jnp.allclose(out, ref, rtol=1e-5, atol=1e-6), (out, ref)

    # Second check: exercises the multi-step accumulator path (grid > 1).
    real2 = jax.random.normal(k3, (2100, 130), dtype=jnp.float32)
    pred2 = real2 + 0.05 * jax.random.normal(k4, (2100, 130), dtype=jnp.float32)
    out2 = jax.block_until_ready(loss_fn(real2, pred2))
    ref2 = _ref_quantile_loss(real2, pred2, q)
    assert jnp.allclose(out2, ref2, rtol=1e-4, atol=1e-6), (out2, ref2)

    print("KERNEL_OK")
</pallas_src>

<mosaic_0001>
module attributes {stable_mosaic.version = 11 : i64} {
  func.func @_quantile_loss_kernel(%arg0: i32, %arg1: i32, %arg2: memref<8x128xf32, #tpu.memory_space<vmem>>, %arg3: memref<8x128xf32, #tpu.memory_space<vmem>>, %arg4: memref<1x8x128xf32, #tpu.memory_space<vmem>>, %arg5: memref<8x128xf32, #tpu.memory_space<vmem>>) attributes {dimension_semantics = [#tpu.dimension_semantics<parallel>, #tpu.dimension_semantics<arbitrary>], iteration_bounds = array<i64: 1, 1>, scalar_prefetch = 0 : i64, scratch_operands = 1 : i64, tpu.core_type = #tpu.core_type<tc>, window_params = [{transform_indices = @transform_0, window_bounds = array<i64: 8, 128>}, {transform_indices = @transform_1, window_bounds = array<i64: 8, 128>}, {transform_indices = @transform_2, window_bounds = array<i64: 1, 8, 128>}]} {
    %c0_i32 = arith.constant 0 : i32
    %0 = arith.cmpi eq, %arg1, %c0_i32 : i32
    %1 = arith.extui %0 : i1 to i32
    %c0_i32_0 = arith.constant 0 : i32
    %2 = arith.cmpi ne, %1, %c0_i32_0 : i32
    scf.if %2 {
      %cst_12 = arith.constant 0.000000e+00 : f32
      %19 = vector.broadcast %cst_12 : f32 to vector<8x128xf32>
      %c0_13 = arith.constant 0 : index
      %c0_14 = arith.constant 0 : index
      %20 = vector.load %arg5[%c0_13, %c0_14] : memref<8x128xf32, #tpu.memory_space<vmem>>, vector<8x128xf32>
      tpu.vector_store %arg5[%c0_13, %c0_14], %19 {strides = array<i32>} : memref<8x128xf32, #tpu.memory_space<vmem>>, vector<8x128xf32>,
    } else {
    }
    %c0 = arith.constant 0 : index
    %c0_1 = arith.constant 0 : index
    %3 = vector.load %arg2[%c0, %c0_1] : memref<8x128xf32, #tpu.memory_space<vmem>>, vector<8x128xf32>
    %c0_2 = arith.constant 0 : index
    %c0_3 = arith.constant 0 : index
    %4 = vector.load %arg3[%c0_2, %c0_3] : memref<8x128xf32, #tpu.memory_space<vmem>>, vector<8x128xf32>
    %5 = arith.subf %3, %4 : vector<8x128xf32>
    %cst = arith.constant 3.000000e-01 : f32
    %6 = vector.broadcast %cst : f32 to vector<8x128xf32>
    %7 = arith.mulf %6, %5 : vector<8x128xf32>
    %cst_4 = arith.constant -0.699999988 : f32
    %8 = vector.broadcast %cst_4 : f32 to vector<8x128xf32>
    %9 = arith.mulf %8, %5 : vector<8x128xf32>
    %10 = arith.maximumf %7, %9 : vector<8x128xf32>
    %c0_5 = arith.constant 0 : index
    %c0_6 = arith.constant 0 : index
    %11 = vector.load %arg5[%c0_5, %c0_6] : memref<8x128xf32, #tpu.memory_space<vmem>>, vector<8x128xf32>
    %12 = vector.shape_cast %10 : vector<8x128xf32> to vector<1x8x128xf32>
    %cst_7 = arith.constant dense<0.000000e+00> : vector<8x128xf32>
    %13 = vector.multi_reduction <add>, %12, %cst_7 [0] : vector<1x8x128xf32> to vector<8x128xf32>
    %14 = arith.addf %11, %13 : vector<8x128xf32>
    %c0_8 = arith.constant 0 : index
    %c0_9 = arith.constant 0 : index
    %15 = vector.load %arg5[%c0_8, %c0_9] : memref<8x128xf32, #tpu.memory_space<vmem>>, vector<8x128xf32>
    tpu.vector_store %arg5[%c0_8, %c0_9], %14 {strides = array<i32>} : memref<8x128xf32, #tpu.memory_space<vmem>>, vector<8x128xf32>,
    %c0_i32_10 = arith.constant 0 : i32
    %16 = arith.cmpi eq, %arg1, %c0_i32_10 : i32
    %17 = arith.extui %16 : i1 to i32
    %c0_i32_11 = arith.constant 0 : i32
    %18 = arith.cmpi ne, %17, %c0_i32_11 : i32
    scf.if %18 {
      %c0_12 = arith.constant 0 : index
      %c0_13 = arith.constant 0 : index
      %19 = vector.load %arg5[%c0_12, %c0_13] : memref<8x128xf32, #tpu.memory_space<vmem>>, vector<8x128xf32>
      %cst_14 = arith.constant 6.250000e-03 : f32
      %20 = vector.broadcast %cst_14 : f32 to vector<8x128xf32>
      %21 = arith.mulf %19, %20 : vector<8x128xf32>
      %c0_15 = arith.constant 0 : index
      %c0_16 = arith.constant 0 : index
      %c0_17 = arith.constant 0 : index
      %22 = vector.load %arg4[%c0_15, %c0_16, %c0_17] : memref<1x8x128xf32, #tpu.memory_space<vmem>>, vector<1x8x128xf32>
      %23 = vector.shape_cast %22 : vector<1x8x128xf32> to vector<8x128xf32>
      %24 = vector.shape_cast %21 : vector<8x128xf32> to vector<1x8x128xf32>
      tpu.vector_store %arg4[%c0_15, %c0_16, %c0_17], %24 {strides = array<i32>} : memref<1x8x128xf32, #tpu.memory_space<vmem>>, vector<1x8x128xf32>,
    } else {
    }
    return
  }
  func.func @transform_0(%arg0: i32, %arg1: i32) -> (i32, i32) {
    %c1_i32 = arith.constant 1 : i32
    %0 = arith.muli %arg0, %c1_i32 : i32
    %1 = arith.addi %0, %arg1 : i32
    %c0_i32 = arith.constant 0 : i32
    %c0_i32_0 = arith.constant 0 : i32
    return %1, %c0_i32 : i32, i32
  }
  func.func @transform_1(%arg0: i32, %arg1: i32) -> (i32, i32) {
    %c1_i32 = arith.constant 1 : i32
    %0 = arith.muli %arg0, %c1_i32 : i32
    %1 = arith.addi %0, %arg1 : i32
    %c0_i32 = arith.constant 0 : i32
    %c0_i32_0 = arith.constant 0 : i32
    return %1, %c0_i32 : i32, i32
  }
  func.func @transform_2(%arg0: i32, %arg1: i32) -> (i32, i32, i32) {
    %c0_i32 = arith.constant 0 : i32
    %c0_i32_0 = arith.constant 0 : i32
    %c0_i32_1 = arith.constant 0 : i32
    return %arg0, %c0_i32, %c0_i32_0 : i32, i32, i32
  }
}

</mosaic_0001>

<bundles_post_ra>
// kernel: tpu_custom_call.1
= control target key start
LH: loop header
LB: loop body
LE: loop exit
PB: predicated region body
PF: predicated region fallthrough
CT: control target
= control target key end

     0   :  { %7 = vsyncpa [#allocation4], 0  ;;  %s210_s0 = inlined_call_operand.hbm [shape: f32[8,128], index: 0, kind: input, shape index: {}]   ;;  %s211_s1 = inlined_call_operand.hbm [shape: f32[8,128], index: 1, kind: input, shape index: {}]   ;;  %s212_s2 = inlined_call_operand.hbm [shape: f32[1,8,128], index: 2, kind: output, shape index: {}]  }
   0x1   :  { %8 = vsyncpa [#allocation7], 0 }
   0x2   :  { %9 = vsyncpa [#allocation5], 0  ;;  %s156_s9 = smov [#allocation3]   ;;  %s157_s11 = smov [#allocation6]  }
   0x3   :  { %s19_s10 = sshll.u32 %s156_s9, 4  ;;  %s32_s12 = sshll.u32 %s157_s11, 4  ;;  %s20_s10 = int_to_ptr.vmem [resolvable:$true] %s19_s10  ;;  %s33_s12 = int_to_ptr.vmem [resolvable:$true] %s32_s12 }
   0x4   :  { %s84_s15 = scalar_lea.hbm %s210_s0, 128 }
   0x5   :  { %p85_p0 = scmp.ne.s32.totalorder %s210_s0, %s84_s15  ;;  %p88_p1 = scmp.lt.u32.totalorder %s84_s15, %s210_s0 }
   0x7   :  { %p90_p2 = pnand %p88_p1, %p85_p0 }
   0x9   :  { %93 = shalt.err (!%p90_p2)
}
   0xa   :  { %s94_s20 = scalar_lea.vmem %s20_s10, 128  ;;  %p99_p4 = scmp.lt.s32.totalorder %s20_s10, %s20_s10 }
   0xb   :  { %p95_p3 = scmp.ne.s32.totalorder %s20_s10, %s94_s20  ;;  %p100_p5 = scmp.lt.s32.totalorder %s94_s20, %s94_s20 }
   0xd   :  { %p101_p6 = por %p100_p5, %p99_p4 }
   0xf   :  { %p102_p7 = pnand %p101_p6, %p95_p3 }
  0x11   :  { %105 = shalt.err (!%p102_p7)
}
  0x12   :  { %22 = dma.hbm_to_vmem [thread:$0]  %s210_s0, 128, %s20_s10, [#allocation4]  }
  0x13   :  { %s106_s25 = scalar_lea.hbm %s211_s1, 128 }
  0x14   :  { %p107_p8 = scmp.ne.s32.totalorder %s211_s1, %s106_s25  ;;  %p110_p9 = scmp.lt.u32.totalorder %s106_s25, %s211_s1 }
  0x16   :  { %p112_p10 = pnand %p110_p9, %p107_p8 }
  0x18   :  { %115 = shalt.err (!%p112_p10)
}
  0x19   :  { %s116_s30 = scalar_lea.vmem %s33_s12, 128  ;;  %p121_p12 = scmp.lt.s32.totalorder %s33_s12, %s33_s12 }
  0x1a   :  { %p117_p11 = scmp.ne.s32.totalorder %s33_s12, %s116_s30  ;;  %p122_p13 = scmp.lt.s32.totalorder %s116_s30, %s116_s30 }
  0x1c   :  { %p123_p0 = por %p122_p13, %p121_p12 }
  0x1e   :  { %p124_p1 = pnand %p123_p0, %p117_p11 }
  0x20   :  { %127 = shalt.err (!%p124_p1)
}
  0x21   :  { %35 = dma.hbm_to_vmem [thread:$0]  %s211_s1, 128, %s33_s12, [#allocation7]  }
  0x22   :  { %150 = dma.done.wait [#allocation4], 128  }
  0x23   :  { %151 = vsyncadd [#allocation4], 4294967168 }
  0x24   :  { %152 = dma.done.wait [#allocation7], 128  }
  0x25   :  { %153 = vsyncadd [#allocation7], 4294967168  ;;  %v49_v0 = vld [vmem:[#allocation3] sm:$0xff]  ;;  %v50_v1 = vld [vmem:[#allocation6] sm:$0xff]  ;;  %s158_s4 = smov [#allocation8]  }
  0x26   :  { %v51_v2 = vsub.f32 %v49_v0, %v50_v1  ;;  %s71_s5 = sshll.u32 %s158_s4, 4  ;;  %s72_s5 = int_to_ptr.vmem [resolvable:$true] %s71_s5 }
  0x27   :  { %s128_s6 = scalar_lea.vmem %s72_s5, 128  ;;  %p133_p3 = scmp.lt.s32.totalorder %s72_s5, %s72_s5 }
  0x28   :  { %v52_v3 = vmul.f32 0.3, %v51_v2  ;;  %v53_v4 = vmul.f32 -0.7, %v51_v2  ;;  %p129_p2 = scmp.ne.s32.totalorder %s72_s5, %s128_s6  ;;  %p134_p4 = scmp.lt.s32.totalorder %s128_s6, %s128_s6 }
  0x2a   :  { %v54_v5 = vmax.f32 %v52_v3, %v53_v4  ;;  %p135_p5 = por %p134_p4, %p133_p3 }
  0x2c   :  { %v63_v6 = vmul.f32 0.00625, %v54_v5  ;;  %p136_p6 = pnand %p135_p5, %p129_p2 }
  0x2e   :  { %64 = vst [vmem:[#allocation8] sm:$0xff] %v63_v6 }
  0x2f   :  { %139 = shalt.err (!%p136_p6)
}
  0x30   :  { %s140_s8 = scalar_lea.hbm %s212_s2, 128 }
  0x31   :  { %p141_p7 = scmp.ne.s32.totalorder %s212_s2, %s140_s8  ;;  %p144_p8 = scmp.lt.u32.totalorder %s140_s8, %s212_s2 }
  0x33   :  { %p146_p9 = pnand %p144_p8, %p141_p7 }
  0x35   :  { %149 = shalt.err (!%p146_p9)
}
  0x36   :  { %74 = dma.vmem_to_hbm [thread:$0]  %s72_s5, 128, %s212_s2, [#allocation5]  }
  0x37   :  { %154 = dma.done.wait [#allocation5], 128  }
  0x38   :  { %155 = vsyncadd [#allocation5], 4294967168 }
  0x39   :  { %78 = vsyncpa [#allocation4], 1 }
  0x3a   :  { %79 = vsyncpa [#allocation7], 1 }
  0x3b   :  { %80 = vsyncpa [#allocation5], 1 }

</bundles_post_ra>
